<compile_context>
chip_gen: v5e
topology: v5e:2x2
jax: 0.10.0
libtpu: 0.0.40
codegen_flags: <defaults>
</compile_context>

<pallas_src>
import functools

import jax
import jax.numpy as jnp
from jax.experimental import pallas as pl
from jax.experimental.pallas import tpu as pltpu

IN_SIZE, H2_SIZE, H3_SIZE, OUT_SIZE = 11, 7, 4, 1
SIZES = [(IN_SIZE, H2_SIZE), (H2_SIZE, H3_SIZE), (H3_SIZE, OUT_SIZE)]
PAD = 128            # lane padding for every feature dim
EPS = 1e-5           # PyTorch BatchNorm1d default


# --------------------------------------------------------------------------
# Kernel: fused 3x (linear[BN-folded] + bias + tanh)
# --------------------------------------------------------------------------
def _net_kernel(x_ref, w_ref, b_ref, o_ref):
    """x_ref: (BB, 128) f32, w_ref: (3, 128, 128) bf16, b_ref: (8, 128) f32.

    Row l of b_ref holds the folded bias of layer l (rows 3..7 are zero and
    unused).  Padded weight rows/cols and bias lanes are zero, so padded
    activation lanes stay exactly 0 through every layer (tanh(0) = 0).
    """
    h = x_ref[...]                                     # (BB, 128) f32
    b = b_ref[...]                                     # (8, 128)  f32, one load
    for l in range(3):                                 # unrolled at trace time
        y = jnp.dot(h.astype(jnp.bfloat16), w_ref[l],  # bf16 MXU, f32 accum
                    preferred_element_type=jnp.float32)
        h = jnp.tanh(y + b[l:l + 1, :])                # f32 VPU/EUP math
    o_ref[...] = h


# --------------------------------------------------------------------------
# One-time param preparation (NOT in the per-call path)
# --------------------------------------------------------------------------
def init_params(key):
    """Deterministic init mimicking PyTorch defaults (U(-1/sqrt(fan_in), .))."""
    params = {}
    keys = jax.random.split(key, 12)
    ki = 0
    for li, (fin, fout) in enumerate(SIZES, start=1):
        bound = 1.0 / jnp.sqrt(jnp.float32(fin))
        w = jax.random.uniform(keys[ki], (fin, fout), jnp.float32, -bound, bound); ki += 1
        b = jax.random.uniform(keys[ki], (fout,), jnp.float32, -bound, bound); ki += 1
        gamma = jnp.ones((fout,), jnp.float32)
        beta = jnp.zeros((fout,), jnp.float32)
        rmean = 0.1 * jax.random.normal(keys[ki], (fout,), jnp.float32); ki += 1
        rvar = 1.0 + 0.1 * jax.random.uniform(keys[ki], (fout,), jnp.float32); ki += 1
        params[f"l{li}"] = dict(w=w, b=b, gamma=gamma, beta=beta, mean=rmean, var=rvar)
    return params


def prepare_params(params):
    """Fold BN into W/b, pad, and pack into two device arrays (run once)."""
    w_stack = jnp.zeros((3, PAD, PAD), jnp.float32)
    b_slab = jnp.zeros((8, PAD), jnp.float32)
    for l, name in enumerate(("l1", "l2", "l3")):
        p = params[name]
        scale = p["gamma"] * jax.lax.rsqrt(p["var"] + EPS)       # (fout,)
        w_f = p["w"].astype(jnp.float32) * scale[None, :]
        b_f = (p["b"] - p["mean"]) * scale + p["beta"]
        fin, fout = p["w"].shape
        w_stack = w_stack.at[l, :fin, :fout].set(w_f)
        b_slab = b_slab.at[l, :fout].set(b_f)
    return {"w": w_stack.astype(jnp.bfloat16),   # (3,128,128) bf16, ~96 KiB
            "b": b_slab}                         # (8,128)     f32,   4 KiB


# --------------------------------------------------------------------------
# Forward wrapper
# --------------------------------------------------------------------------
def _round_up(n, m):
    return ((n + m - 1) // m) * m


@functools.partial(jax.jit, static_argnames=("batch_block",))
def net_forward(x, prepared, *, batch_block=256):
    """x: (B, 11) float32 -> (B, 1) float32 (eval-mode forward)."""
    n = x.shape[0]
    n8 = _round_up(max(n, 1), 8)
    bb = batch_block if n8 >= batch_block else n8      # batch tile (mult of 8)
    n_pad = _round_up(n8, bb)

    x_pad = jnp.zeros((n_pad, PAD), jnp.float32).at[:n, :IN_SIZE].set(
        x.astype(jnp.float32))

    out = pl.pallas_call(
        _net_kernel,
        out_shape=jax.ShapeDtypeStruct((n_pad, PAD), jnp.float32),
        grid=(n_pad // bb,),
        in_specs=[
            pl.BlockSpec((bb, PAD), lambda i: (i, 0)),        # x tile
            pl.BlockSpec((3, PAD, PAD), lambda i: (0, 0, 0)), # weights (resident)
            pl.BlockSpec((8, PAD), lambda i: (0, 0)),         # biases  (resident)
        ],
        out_specs=pl.BlockSpec((bb, PAD), lambda i: (i, 0)),
        compiler_params=pltpu.CompilerParams(
            dimension_semantics=("parallel",)),
    )(x_pad, prepared["w"], prepared["b"])

    return out[:n, :OUT_SIZE]


# --------------------------------------------------------------------------
# References for verification
# --------------------------------------------------------------------------
def _reference_f32(x, params):
    """Pure-JAX eval-mode forward with full f32 (un-folded) params."""
    h = x
    for li in (1, 2, 3):
        p = params[f"l{li}"]
        h = h @ p["w"] + p["b"]
        h = (h - p["mean"]) * (p["gamma"] / jnp.sqrt(p["var"] + EPS)) + p["beta"]
        h = jnp.tanh(h)
    return h


def _reference_emulated(x, prepared):
    """Pure-JAX forward using the exact prepared (bf16 weight) arrays."""
    n = x.shape[0]
    h = jnp.zeros((n, PAD), jnp.float32).at[:, :IN_SIZE].set(x)
    w = prepared["w"].astype(jnp.float32)
    b = prepared["b"]
    for l in range(3):
        h = jnp.tanh(h.astype(jnp.bfloat16).astype(jnp.float32) @ w[l]
                     + b[l:l + 1, :])
    return h[:, :OUT_SIZE]


# --------------------------------------------------------------------------
if __name__ == "__main__":
    key = jax.random.PRNGKey(0)
    k_param, k_x = jax.random.split(key)

    params = init_params(k_param)
    prepared = prepare_params(params)          # once, outside the hot path
    prepared = jax.tree_util.tree_map(jax.block_until_ready, prepared)

    batch = 8
    x = jax.random.normal(k_x, (batch, IN_SIZE), dtype=jnp.float32)

    y = net_forward(x, prepared)
    y = jax.block_until_ready(y)
    assert y.shape == (batch, OUT_SIZE)

    # Tight check vs a reference that uses the same bf16 weights / bf16 dot inputs.
    y_emu = _reference_emulated(x, prepared)
    assert jnp.max(jnp.abs(y - y_emu)) < 1e-4, "mismatch vs emulated reference"

    # Semantic sanity check vs the full-precision eval-mode module (bf16 tol).
    y_ref = _reference_f32(x, params)
    assert jnp.max(jnp.abs(y - y_ref)) < 5e-2, "mismatch vs f32 eval-mode reference"

    print("KERNEL_OK")
</pallas_src>

<mosaic_0001>
module attributes {stable_mosaic.version = 11 : i64} {
  func.func @_net_kernel(%arg0: i32, %arg1: memref<8x128xf32, #tpu.memory_space<vmem>>, %arg2: memref<3x128x128xbf16, #tpu.memory_space<vmem>>, %arg3: memref<8x128xf32, #tpu.memory_space<vmem>>, %arg4: memref<8x128xf32, #tpu.memory_space<vmem>>) attributes {dimension_semantics = [#tpu.dimension_semantics<parallel>], iteration_bounds = array<i64: 1>, scalar_prefetch = 0 : i64, scratch_operands = 0 : i64, tpu.core_type = #tpu.core_type<tc>, window_params = [{transform_indices = @transform_0, window_bounds = array<i64: 8, 128>}, {pipeline_mode = #tpu.pipeline_mode<synchronous>, transform_indices = @transform_1, window_bounds = array<i64: 3, 128, 128>}, {pipeline_mode = #tpu.pipeline_mode<synchronous>, transform_indices = @transform_2, window_bounds = array<i64: 8, 128>}, {transform_indices = @transform_3, window_bounds = array<i64: 8, 128>}]} {
    %c0 = arith.constant 0 : index
    %c0_0 = arith.constant 0 : index
    %0 = vector.load %arg1[%c0, %c0_0] : memref<8x128xf32, #tpu.memory_space<vmem>>, vector<8x128xf32>
    %c0_1 = arith.constant 0 : index
    %c0_2 = arith.constant 0 : index
    %1 = vector.load %arg3[%c0_1, %c0_2] : memref<8x128xf32, #tpu.memory_space<vmem>>, vector<8x128xf32>
    %2 = arith.truncf %0 : vector<8x128xf32> to vector<8x128xbf16>
    %c0_3 = arith.constant 0 : index
    %c0_4 = arith.constant 0 : index
    %c0_5 = arith.constant 0 : index
    %3 = vector.load %arg2[%c0_3, %c0_4, %c0_5] : memref<3x128x128xbf16, #tpu.memory_space<vmem>>, vector<1x128x128xbf16>
    %4 = vector.shape_cast %3 : vector<1x128x128xbf16> to vector<128x128xbf16>
    %cst = arith.constant dense<0.000000e+00> : vector<8x128xf32>
    %5 = tpu.matmul %2, %4, %cst {dimension_numbers = #tpu.dot_dimension_numbers<[1], [0], [0], [1], [0, 0, 1, 1], [], []>} : vector<8x128xbf16>, vector<128x128xbf16>, vector<8x128xf32> -> vector<8x128xf32>
    %6 = vector.extract_strided_slice %1 {offsets = [0, 0], sizes = [1, 128], strides = [1, 1]} : vector<8x128xf32> to vector<1x128xf32>
    %7 = vector.broadcast %6 : vector<1x128xf32> to vector<8x128xf32>
    %8 = arith.addf %5, %7 : vector<8x128xf32>
    %9 = math.tanh %8 : vector<8x128xf32>
    %10 = arith.truncf %9 : vector<8x128xf32> to vector<8x128xbf16>
    %c1 = arith.constant 1 : index
    %c0_6 = arith.constant 0 : index
    %c0_7 = arith.constant 0 : index
    %11 = vector.load %arg2[%c1, %c0_6, %c0_7] : memref<3x128x128xbf16, #tpu.memory_space<vmem>>, vector<1x128x128xbf16>
    %12 = vector.shape_cast %11 : vector<1x128x128xbf16> to vector<128x128xbf16>
    %cst_8 = arith.constant dense<0.000000e+00> : vector<8x128xf32>
    %13 = tpu.matmul %10, %12, %cst_8 {dimension_numbers = #tpu.dot_dimension_numbers<[1], [0], [0], [1], [0, 0, 1, 1], [], []>} : vector<8x128xbf16>, vector<128x128xbf16>, vector<8x128xf32> -> vector<8x128xf32>
    %14 = vector.extract_strided_slice %1 {offsets = [1, 0], sizes = [1, 128], strides = [1, 1]} : vector<8x128xf32> to vector<1x128xf32>
    %15 = vector.broadcast %14 : vector<1x128xf32> to vector<8x128xf32>
    %16 = arith.addf %13, %15 : vector<8x128xf32>
    %17 = math.tanh %16 : vector<8x128xf32>
    %18 = arith.truncf %17 : vector<8x128xf32> to vector<8x128xbf16>
    %c2 = arith.constant 2 : index
    %c0_9 = arith.constant 0 : index
    %c0_10 = arith.constant 0 : index
    %19 = vector.load %arg2[%c2, %c0_9, %c0_10] : memref<3x128x128xbf16, #tpu.memory_space<vmem>>, vector<1x128x128xbf16>
    %20 = vector.shape_cast %19 : vector<1x128x128xbf16> to vector<128x128xbf16>
    %cst_11 = arith.constant dense<0.000000e+00> : vector<8x128xf32>
    %21 = tpu.matmul %18, %20, %cst_11 {dimension_numbers = #tpu.dot_dimension_numbers<[1], [0], [0], [1], [0, 0, 1, 1], [], []>} : vector<8x128xbf16>, vector<128x128xbf16>, vector<8x128xf32> -> vector<8x128xf32>
    %22 = vector.extract_strided_slice %1 {offsets = [2, 0], sizes = [1, 128], strides = [1, 1]} : vector<8x128xf32> to vector<1x128xf32>
    %23 = vector.broadcast %22 : vector<1x128xf32> to vector<8x128xf32>
    %24 = arith.addf %21, %23 : vector<8x128xf32>
    %25 = math.tanh %24 : vector<8x128xf32>
    %c0_12 = arith.constant 0 : index
    %c0_13 = arith.constant 0 : index
    %26 = vector.load %arg4[%c0_12, %c0_13] : memref<8x128xf32, #tpu.memory_space<vmem>>, vector<8x128xf32>
    tpu.vector_store %arg4[%c0_12, %c0_13], %25 {strides = array<i32>} : memref<8x128xf32, #tpu.memory_space<vmem>>, vector<8x128xf32>,
    return
  }
  func.func @transform_0(%arg0: i32) -> (i32, i32) {
    %c0_i32 = arith.constant 0 : i32
    %c0_i32_0 = arith.constant 0 : i32
    return %arg0, %c0_i32 : i32, i32
  }
  func.func @transform_1(%arg0: i32) -> (i32, i32, i32) {
    %c0_i32 = arith.constant 0 : i32
    %c0_i32_0 = arith.constant 0 : i32
    %c0_i32_1 = arith.constant 0 : i32
    %c0_i32_2 = arith.constant 0 : i32
    return %c0_i32, %c0_i32_0, %c0_i32_1 : i32, i32, i32
  }
  func.func @transform_2(%arg0: i32) -> (i32, i32) {
    %c0_i32 = arith.constant 0 : i32
    %c0_i32_0 = arith.constant 0 : i32
    %c0_i32_1 = arith.constant 0 : i32
    return %c0_i32, %c0_i32_0 : i32, i32
  }
  func.func @transform_3(%arg0: i32) -> (i32, i32) {
    %c0_i32 = arith.constant 0 : i32
    %c0_i32_0 = arith.constant 0 : i32
    return %arg0, %c0_i32 : i32, i32
  }
}

</mosaic_0001>

<bundles_post_ra>
// kernel: net_forward.1
= control target key start
LH: loop header
LB: loop body
LE: loop exit
PB: predicated region body
PF: predicated region fallthrough
CT: control target
= control target key end

     0   :  { %8 = vsyncpa [#allocation3], 0  ;;  %s435_s15 = smov [#allocation2]   ;;  %s436_s17 = smov 64   ;;  %s470_s0 = inlined_call_operand.vmem [shape: f32[8,128], index: 0, kind: input, shape index: {}]   ;;  %s471_s1 = inlined_call_operand.hbm [shape: bf16[3,128,128], index: 1, kind: input, shape index: {}]   ;;  %s472_s2 = inlined_call_operand.vmem [shape: f32[8,128], index: 2, kind: input, shape index: {}]   ;;  %s473_s3 = inlined_call_operand.vmem [shape: f32[8,128], index: 3, kind: output, shape index: {}]  }
   0x1   :  { %s15_s14 = sshll.u32 %s471_s1, 4  ;;  %s17_s16 = sshll.u32 %s435_s15, 4  ;;  %s16_s14 = int_to_ptr.hbm [resolvable:$true] %s15_s14  ;;  %s18_s16 = int_to_ptr.vmem [resolvable:$true] %s17_s16 }
   0x2   :  { %s437_s18 = smov 4  }
   0x3   :  { %23 = dma.hbm_to_vmem [thread:$0]  %s16_s14, 3072, %s18_s16, [#allocation3], %s436_s17, %s436_s17, %s437_s18  }
   0x4   :  { %433 = dma.done.wait [#allocation3], 3072  }
   0x5   :  { %434 = vsyncadd [#allocation3], 4294964224  ;;  %v383_v0 = vld [vmem:[#allocation2 + $0x38] sm:$0xff]  ;;  %v382_v1 = vld [vmem:[#allocation2 + $0x30] sm:$0xff] }
   0x6   :  { %98 = vmatpush.bf16.msra.mxu0 %v383_v0  ;;  %v391_v2 = vld [vmem:[#allocation2 + $0x78] sm:$0xff]  ;;  %v390_v3 = vld [vmem:[#allocation2 + $0x70] sm:$0xff]  ;;  %v381_v4 = vld [vmem:[#allocation2 + $0x28] sm:$0xff] }
   0x7   :  { %179 = vmatpush.bf16.msra.mxu1 %v391_v2  ;;  %v389_v5 = vld [vmem:[#allocation2 + $0x68] sm:$0xff]  ;;  %v380_v6 = vld [vmem:[#allocation2 + $0x20] sm:$0xff]  ;;  %v379_v8 = vld [vmem:[#allocation2 + $0x18] sm:$0xff] }
   0x8   :  { %v388_v7 = vld [vmem:[#allocation2 + $0x60] sm:$0xff]  ;;  %v387_v9 = vld [vmem:[#allocation2 + $0x58] sm:$0xff]  ;;  %v378_v10 = vld [vmem:[#allocation2 + $0x10] sm:$0xff] }
   0x9   :  { %v377_v11 = vld [vmem:[#allocation2 + $0x8] sm:$0xff]  ;;  %v376_v12 = vld [vmem:[#allocation2] sm:$0xff]  ;;  %v386_v15 = vld [vmem:[#allocation2 + $0x50] sm:$0xff] }
   0xa   :  { %99 = vmatpush.bf16.msra.mxu0 %v382_v1  ;;  %v30_v13 = vld [vmem:[%s470_s0] sm:$0xff]  ;;  %v385_v16 = vld [vmem:[#allocation2 + $0x48] sm:$0xff]  ;;  %v399_v18 = vld [vmem:[#allocation2 + $0xb8] sm:$0xff] }
   0xb   :  { %180 = vmatpush.bf16.msra.mxu1 %v390_v3  ;;  %v32_v14 = vpack.c.bf16 %v30_v13, %v30_v13  ;;  %v384_v17 = vld [vmem:[#allocation2 + $0x40] sm:$0xff]  ;;  %260 = vmatpush.bf16.msra.mxu2 %v399_v18  ;;  %v398_v19 = vld [vmem:[#allocation2 + $0xb0] sm:$0xff]  ;;  %v397_v20 = vld [vmem:[#allocation2 + $0xa8] sm:$0xff] }
   0xc   :  { %v396_v21 = vld [vmem:[#allocation2 + $0xa0] sm:$0xff]  ;;  %v395_v23 = vld [vmem:[#allocation2 + $0x98] sm:$0xff]  ;;  %v394_v30 = vld [vmem:[#allocation2 + $0x90] sm:$0xff] }
   0xd   :  { %v31_v22 = vld [vmem:[%s472_s2] sm:$0xff]  ;;  %v393_v31 = vld [vmem:[#allocation2 + $0x88] sm:$0xff] }
   0xe   :  { %100 = vmatpush.bf16.msra.mxu0 %v381_v4  ;;  %v49_v24 = vperm.slane %v31_v22, 0  ;;  %v392_v32 = vld [vmem:[#allocation2 + $0x80] sm:$0xff]  ;;  %v130_v33 = vperm.slane %v31_v22, 1  ;;  %v211_v39 = vperm.slane %v31_v22, 2 }
   0xf   :  { %181 = vmatpush.bf16.msra.mxu1 %v389_v5  ;;  %261 = vmatpush.bf16.msra.mxu2 %v398_v19 }
  0x12   :  { %101 = vmatpush.bf16.msra.mxu0 %v380_v6 }
  0x13   :  { %182 = vmatpush.bf16.msra.mxu1 %v388_v7  ;;  %262 = vmatpush.bf16.msra.mxu2 %v397_v20 }
  0x16   :  { %102 = vmatpush.bf16.msra.mxu0 %v379_v8 }
  0x17   :  { %183 = vmatpush.bf16.msra.mxu1 %v387_v9  ;;  %263 = vmatpush.bf16.msra.mxu2 %v396_v21 }
  0x1a   :  { %103 = vmatpush.bf16.msra.mxu0 %v378_v10 }
  0x1b   :  { %184 = vmatpush.bf16.msra.mxu1 %v386_v15  ;;  %264 = vmatpush.bf16.msra.mxu2 %v395_v23 }
  0x1e   :  { %104 = vmatpush.bf16.msra.mxu0 %v377_v11 }
  0x1f   :  { %185 = vmatpush.bf16.msra.mxu1 %v385_v16  ;;  %265 = vmatpush.bf16.msra.mxu2 %v394_v30 }
  0x22   :  { %105 = vmatpush.bf16.msra.mxu0 %v376_v12 }
  0x23   :  { %186 = vmatpush.bf16.msra.mxu1 %v384_v17  ;;  %266 = vmatpush.bf16.msra.mxu2 %v393_v31 }
  0x25   :  { %106 = vmatmul.bf16.vlgmr.msra.gmra.mxu0 %v32_v14 }
  0x27   :  { %267 = vmatpush.bf16.msra.mxu2 %v392_v32 }
  0xa2   :  { %v107_v25 = vpop.f32.mrf.mxu0 }
  0xa3   :  { %v108_v26 = vadd.f32 %v107_v25, %v49_v24 }
  0xa5   :  { %403 = vtanh.f32 %v108_v26 }
  0xaa   :  { %v109_v27 = vpop.f32.mrf.mxu0 }
  0xab   :  { %v404_v28 = vpop.eup %403 }
  0xac   :  { %v112_v29 = vpack.c.bf16 %v404_v28, %v404_v28 }
  0xae   :  { %187 = vmatmul.bf16.vlgmr.msra.gmra.mxu1 %v112_v29 }
 0x12b   :  { %v188_v34 = vpop.f32.mrf.mxu1 }
 0x12c   :  { %v189_v35 = vadd.f32 %v188_v34, %v130_v33 }
 0x12e   :  { %405 = vtanh.f32 %v189_v35 }
 0x133   :  { %v190_v36 = vpop.f32.mrf.mxu1 }
 0x134   :  { %v406_v37 = vpop.eup %405 }
 0x135   :  { %v193_v38 = vpack.c.bf16 %v406_v37, %v406_v37 }
 0x137   :  { %268 = vmatmul.bf16.vlgmr.msra.gmra.mxu2 %v193_v38 }
 0x1ba   :  { %v269_v40 = vpop.f32.mrf.mxu2 }
 0x1bb   :  { %v270_v41 = vadd.f32 %v269_v40, %v211_v39 }
 0x1bd   :  { %407 = vtanh.f32 %v270_v41 }
 0x1c2   :  { %v271_v42 = vpop.f32.mrf.mxu2 }
 0x1c3   :  { %v408_v43 = vpop.eup %407 }
 0x1c4   :  { %274 = vst [vmem:[%s473_s3] sm:$0xff] %v408_v43 }
 0x1c5   :  { %279 = vsyncpa [#allocation3], 1 }

</bundles_post_ra>
